<compile_context>
chip_gen: v7x
topology: tpu7x:2x2x1
jax: 0.10.0
libtpu: 0.0.40
codegen_flags: <defaults>
</compile_context>

<pallas_src>
import jax
import jax.numpy as jnp
from jax.experimental import pallas as pl
from jax.experimental.pallas import tpu as pltpu


def _round_up(n, m):
    return ((n + m - 1) // m) * m


def mlp_kernel(p_ref, x_ref, o_ref):
    # p_ref (SMEM, f32[13]): [w1(3,2) row-major: 0..5 | b1: 6..8 | w2(1,3): 9..11 | b2: 12]
    # x_ref (VMEM): (2, bt)  -- features on sublanes, batch on lanes
    # o_ref (VMEM): (1, bt)  -- lane-dense output
    x0 = x_ref[0:1, :]                       # (1, bt)
    x1 = x_ref[1:2, :]                       # (1, bt)

    # Output accumulator starts at b2 (scalar broadcast); hidden units unrolled.
    z = p_ref[12] + jnp.zeros_like(x0)       # (1, bt)
    for j in range(3):                        # unrolled at trace time
        h_j = p_ref[2 * j] * x0 + p_ref[2 * j + 1] * x1 + p_ref[6 + j]
        h_j = jnp.maximum(h_j, 0.0)           # ReLU
        z = z + p_ref[9 + j] * h_j

    o_ref[...] = jax.nn.sigmoid(z).astype(o_ref.dtype)


def mlp_forward(x, w1, b1, w2, b2, *, block_b=8192):
    """x: (B, 2); w1: (3, 2) PyTorch layout; b1: (3,); w2: (1, 3); b2: (1,)."""
    B = x.shape[0]
    dtype = x.dtype

    # Lane tile: multiple of 128, no bigger than needed, capped at block_b.
    bt = min(_round_up(block_b, 128), _round_up(B, 128))
    Bp = _round_up(B, bt)
    grid = (Bp // bt,)

    # Glue: batch -> lanes, pad batch to a lane-tile multiple.
    x_t = jnp.pad(x.astype(jnp.float32).T, ((0, 0), (0, Bp - B)))   # (2, Bp)

    # Flatten all parameters into one small scalar vector (scalar-prefetched to SMEM).
    params = jnp.concatenate(
        [w1.reshape(-1), b1.reshape(-1), w2.reshape(-1), b2.reshape(-1)]
    ).astype(jnp.float32)                                            # (13,)

    out_t = pl.pallas_call(
        mlp_kernel,
        out_shape=jax.ShapeDtypeStruct((1, Bp), jnp.float32),
        grid_spec=pltpu.PrefetchScalarGridSpec(
            num_scalar_prefetch=1,
            grid=grid,
            in_specs=[pl.BlockSpec((2, bt), lambda i, p: (0, i))],   # x tile
            out_specs=pl.BlockSpec((1, bt), lambda i, p: (0, i)),    # lane-dense output
        ),
        compiler_params=pltpu.CompilerParams(
            dimension_semantics=("parallel",),
        ),
    )(params, x_t)

    # Back to PyTorch layout (B, 1).
    return out_t[0, :B].reshape(B, 1).astype(dtype)


def mlp_reference(x, w1, b1, w2, b2):
    h = jnp.maximum(x @ w1.T + b1, 0.0)
    return jax.nn.sigmoid(h @ w2.T + b2)


if __name__ == "__main__":
    key = jax.random.PRNGKey(0)
    kx, kw1, kw2 = jax.random.split(key, 3)

    B = 8
    x = jax.random.normal(kx, (B, 2), dtype=jnp.float32)

    # Deterministic parameter init matching the module's __init__:
    # weights ~ N(0, 0.1), biases = 0.
    w1 = 0.1 * jax.random.normal(kw1, (3, 2), dtype=jnp.float32)  # hidden.weight
    b1 = jnp.zeros((3,), dtype=jnp.float32)                       # hidden.bias
    w2 = 0.1 * jax.random.normal(kw2, (1, 3), dtype=jnp.float32)  # out.weight
    b2 = jnp.zeros((1,), dtype=jnp.float32)                       # out.bias

    out = mlp_forward(x, w1, b1, w2, b2)
    out = jax.block_until_ready(out)

    ref = mlp_reference(x, w1, b1, w2, b2)
    assert out.shape == (B, 1)
    assert jnp.allclose(out, ref, atol=1e-6, rtol=1e-5), (out, ref)
    print("KERNEL_OK")
</pallas_src>

<mosaic_0001>
module attributes {stable_mosaic.version = 11 : i64} {
  func.func @mlp_kernel(%arg0: i32, %arg1: memref<13xf32, #tpu.memory_space<smem>>, %arg2: memref<2x128xf32, #tpu.memory_space<vmem>>, %arg3: memref<1x128xf32, #tpu.memory_space<vmem>>) attributes {dimension_semantics = [#tpu.dimension_semantics<parallel>], iteration_bounds = array<i64: 1>, scalar_prefetch = 1 : i64, scratch_operands = 0 : i64, tpu.core_type = #tpu.core_type<tc>, window_params = [{transform_indices = @transform_0, window_bounds = array<i64: 2, 128>}, {transform_indices = @transform_1, window_bounds = array<i64: 1, 128>}]} {
    %c0 = arith.constant 0 : index
    %c0_0 = arith.constant 0 : index
    %0 = vector.load %arg2[%c0, %c0_0] : memref<2x128xf32, #tpu.memory_space<vmem>>, vector<1x128xf32>
    %c1 = arith.constant 1 : index
    %c0_1 = arith.constant 0 : index
    %1 = vector.load %arg2[%c1, %c0_1] : memref<2x128xf32, #tpu.memory_space<vmem>>, vector<1x128xf32>
    %c12 = arith.constant 12 : index
    %2 = memref.load %arg1[%c12] : memref<13xf32, #tpu.memory_space<smem>>
    %cst = arith.constant 0.000000e+00 : f32
    %3 = vector.broadcast %cst : f32 to vector<1x128xf32>
    %4 = vector.broadcast %2 : f32 to vector<1x128xf32>
    %5 = arith.addf %4, %3 : vector<1x128xf32>
    %c0_2 = arith.constant 0 : index
    %6 = memref.load %arg1[%c0_2] : memref<13xf32, #tpu.memory_space<smem>>
    %7 = vector.broadcast %6 : f32 to vector<1x128xf32>
    %8 = arith.mulf %7, %0 : vector<1x128xf32>
    %c1_3 = arith.constant 1 : index
    %9 = memref.load %arg1[%c1_3] : memref<13xf32, #tpu.memory_space<smem>>
    %10 = vector.broadcast %9 : f32 to vector<1x128xf32>
    %11 = arith.mulf %10, %1 : vector<1x128xf32>
    %12 = arith.addf %8, %11 : vector<1x128xf32>
    %c6 = arith.constant 6 : index
    %13 = memref.load %arg1[%c6] : memref<13xf32, #tpu.memory_space<smem>>
    %14 = vector.broadcast %13 : f32 to vector<1x128xf32>
    %15 = arith.addf %12, %14 : vector<1x128xf32>
    %cst_4 = arith.constant 0.000000e+00 : f32
    %16 = vector.broadcast %cst_4 : f32 to vector<1x128xf32>
    %17 = arith.maximumf %15, %16 : vector<1x128xf32>
    %c9 = arith.constant 9 : index
    %18 = memref.load %arg1[%c9] : memref<13xf32, #tpu.memory_space<smem>>
    %19 = vector.broadcast %18 : f32 to vector<1x128xf32>
    %20 = arith.mulf %19, %17 : vector<1x128xf32>
    %21 = arith.addf %5, %20 : vector<1x128xf32>
    %c2 = arith.constant 2 : index
    %22 = memref.load %arg1[%c2] : memref<13xf32, #tpu.memory_space<smem>>
    %23 = vector.broadcast %22 : f32 to vector<1x128xf32>
    %24 = arith.mulf %23, %0 : vector<1x128xf32>
    %c3 = arith.constant 3 : index
    %25 = memref.load %arg1[%c3] : memref<13xf32, #tpu.memory_space<smem>>
    %26 = vector.broadcast %25 : f32 to vector<1x128xf32>
    %27 = arith.mulf %26, %1 : vector<1x128xf32>
    %28 = arith.addf %24, %27 : vector<1x128xf32>
    %c7 = arith.constant 7 : index
    %29 = memref.load %arg1[%c7] : memref<13xf32, #tpu.memory_space<smem>>
    %30 = vector.broadcast %29 : f32 to vector<1x128xf32>
    %31 = arith.addf %28, %30 : vector<1x128xf32>
    %cst_5 = arith.constant 0.000000e+00 : f32
    %32 = vector.broadcast %cst_5 : f32 to vector<1x128xf32>
    %33 = arith.maximumf %31, %32 : vector<1x128xf32>
    %c10 = arith.constant 10 : index
    %34 = memref.load %arg1[%c10] : memref<13xf32, #tpu.memory_space<smem>>
    %35 = vector.broadcast %34 : f32 to vector<1x128xf32>
    %36 = arith.mulf %35, %33 : vector<1x128xf32>
    %37 = arith.addf %21, %36 : vector<1x128xf32>
    %c4 = arith.constant 4 : index
    %38 = memref.load %arg1[%c4] : memref<13xf32, #tpu.memory_space<smem>>
    %39 = vector.broadcast %38 : f32 to vector<1x128xf32>
    %40 = arith.mulf %39, %0 : vector<1x128xf32>
    %c5 = arith.constant 5 : index
    %41 = memref.load %arg1[%c5] : memref<13xf32, #tpu.memory_space<smem>>
    %42 = vector.broadcast %41 : f32 to vector<1x128xf32>
    %43 = arith.mulf %42, %1 : vector<1x128xf32>
    %44 = arith.addf %40, %43 : vector<1x128xf32>
    %c8 = arith.constant 8 : index
    %45 = memref.load %arg1[%c8] : memref<13xf32, #tpu.memory_space<smem>>
    %46 = vector.broadcast %45 : f32 to vector<1x128xf32>
    %47 = arith.addf %44, %46 : vector<1x128xf32>
    %cst_6 = arith.constant 0.000000e+00 : f32
    %48 = vector.broadcast %cst_6 : f32 to vector<1x128xf32>
    %49 = arith.maximumf %47, %48 : vector<1x128xf32>
    %c11 = arith.constant 11 : index
    %50 = memref.load %arg1[%c11] : memref<13xf32, #tpu.memory_space<smem>>
    %51 = vector.broadcast %50 : f32 to vector<1x128xf32>
    %52 = arith.mulf %51, %49 : vector<1x128xf32>
    %53 = arith.addf %37, %52 : vector<1x128xf32>
    %54 = arith.negf %53 : vector<1x128xf32>
    %55 = math.exp %54 : vector<1x128xf32>
    %cst_7 = arith.constant 1.000000e+00 : f32
    %56 = vector.broadcast %cst_7 : f32 to vector<1x128xf32>
    %57 = arith.addf %56, %55 : vector<1x128xf32>
    %58 = arith.divf %56, %57 : vector<1x128xf32>
    %c0_8 = arith.constant 0 : index
    %c0_9 = arith.constant 0 : index
    %59 = vector.load %arg3[%c0_8, %c0_9] : memref<1x128xf32, #tpu.memory_space<vmem>>, vector<1x128xf32>
    tpu.vector_store %arg3[%c0_8, %c0_9], %58 {strides = array<i32>} : memref<1x128xf32, #tpu.memory_space<vmem>>, vector<1x128xf32>,
    return
  }
  func.func @transform_0(%arg0: i32, %arg1: memref<13xf32, #tpu.memory_space<smem>>) -> (i32, i32) {
    %c0_i32 = arith.constant 0 : i32
    %c0_i32_0 = arith.constant 0 : i32
    return %c0_i32, %arg0 : i32, i32
  }
  func.func @transform_1(%arg0: i32, %arg1: memref<13xf32, #tpu.memory_space<smem>>) -> (i32, i32) {
    %c0_i32 = arith.constant 0 : i32
    %c0_i32_0 = arith.constant 0 : i32
    return %c0_i32, %arg0 : i32, i32
  }
}

</mosaic_0001>

<bundles_post_ra>
// kernel: tpu_custom_call.1
= control target key start
LH: loop header
LB: loop body
LE: loop exit
PB: predicated region body
PF: predicated region fallthrough
CT: control target
= control target key end

     0   :  { %s193_s0 = inlined_call_operand.hbm [shape: f32[13], index: 0, kind: input, shape index: {}]   ;;  %s194_s1 = inlined_call_operand.vmem [shape: f32[2,128], index: 1, kind: input, shape index: {}]   ;;  %s195_s2 = inlined_call_operand.hbm [shape: f32[1,128], index: 2, kind: output, shape index: {}]  }
   0x1   :  { %s104_s11 = scalar_lea.hbm %s193_s0, 16 }
   0x2   :  { %p105_p0 = scmp.ne.s32.totalorder %s193_s0, %s104_s11  ;;  %p108_p1 = scmp.lt.u32.totalorder %s104_s11, %s193_s0 }
   0x4   :  { %p110_p2 = pnand %p108_p1, %p105_p0 }
   0x6   :  { %113 = shalt.err (!%p110_p2)  }
   0x7   :  { %s140_s16 = smov [#allocation3]  }
   0x8   :  { %8 = dma.hbm_to_smem %s193_s0, 16, %s140_s16, [#allocation2] }
   0x9   :  { %136 = dma.done.wait [#allocation2], 16 }
   0xa   :  { %137 = vsyncadd [#allocation2], 4294967280 }
   0xb   :  { %10 = sfence }
   0xc   :  { %s19_s19 = sld [smem:[#allocation3]]  ;;  %s86_s20 = sld [smem:[#allocation3 + $0x1]] }
   0xd   :  { %11 = vsyncpa [#allocation5], 0  ;;  %s87_s21 = sld [smem:[#allocation3 + $0x6]]  ;;  %s89_s22 = sld [smem:[#allocation3 + $0x2]]  ;;  %v14_v0 = vld [vmem:[%s194_s1] sm:$0x1] }
   0xe   :  { %s90_s23 = sld [smem:[#allocation3 + $0x3]]  ;;  %s172_s26 = sld [smem:[#allocation3 + $0x9]]  ;;  %v15_v1 = vld [vmem:[%s194_s1 + $0x1] sm:$0x1] }
   0xf   :  { %s91_s27 = sld [smem:[#allocation3 + $0x7]]  ;;  %s93_s0 = sld [smem:[#allocation3 + $0x4]] }
  0x10   :  { %s94_s30 = sld [smem:[#allocation3 + $0x5]]  ;;  %s95_s3 = sld [smem:[#allocation3 + $0x8]] }
  0x11   :  { %s177_s4 = sld [smem:[#allocation3 + $0xc]]  ;;  %s92_s5 = sld [smem:[#allocation3 + $0xa]] }
  0x12   :  { %v20_v2 = vstv %s19_s19  ;;  %v23_v3 = vstv %s86_s20  ;;  %s96_s6 = sld [smem:[#allocation3 + $0xb]]  ;;  %s141_s1 = smov [#allocation4]  }
  0x13   :  { %v21_v4 = vmul.f32 %v20_v2, %v14_v0  ;;  %v24_v5 = vmul.f32 %v23_v3, %v15_v1  ;;  %v27_v6 = vstv %s87_s21  ;;  %v35_v7 = vstv %s89_s22  ;;  %s77_s7 = sshll.u32 %s141_s1, 4  ;;  %s78_s7 = int_to_ptr.vmem [resolvable:$true] %s77_s7 }
  0x14   :  { %v38_v8 = vstv %s90_s23  ;;  %v36_v10 = vmul.f32 %v35_v7, %v14_v0  ;;  %v31_v19 = vstv %s172_s26  ;;  %s114_s8 = scalar_lea.vmem %s78_s7, 16  ;;  %s118_s9 = scalar_lea.vmem %s78_s7, 32 }
  0x15   :  { %v25_v9 = vadd.f32 %v24_v5, %v21_v4  ;;  %v39_v11 = vmul.f32 %v38_v8, %v15_v1  ;;  %v42_v12 = vstv %s91_s27  ;;  %v50_v13 = vstv %s93_s0  ;;  %p115_p3 = scmp.ne.s32.totalorder %s78_s7, %s114_s8  ;;  %p119_p4 = scmp.lt.s32.totalorder %s78_s7, %s78_s7 }
  0x16   :  { %v53_v14 = vstv %s94_s30  ;;  %v51_v17 = vmul.f32 %v50_v13, %v14_v0  ;;  %v57_v20 = vstv %s95_s3  ;;  %p120_p5 = scmp.lt.s32.totalorder %s118_s9, %s114_s8 }
  0x17   :  { %v28_v15 = vadd.f32 %v27_v6, %v25_v9  ;;  %v40_v16 = vadd.f32 %v39_v11, %v36_v10  ;;  %v54_v18 = vmul.f32 %v53_v14, %v15_v1  ;;  %v17_v24 = vstv %s177_s4 }
  0x18   :  { %v46_v25 = vstv %s92_s5  ;;  %v61_v29 = vstv %s96_s6  ;;  %p121_p6 = por %p120_p5, %p119_p4 }
  0x19   :  { %v29_v21 = vmax.f32 %v28_v15, 0.0  ;;  %v43_v22 = vadd.f32 %v42_v12, %v40_v16  ;;  %v55_v23 = vadd.f32 %v54_v18, %v51_v17 }
  0x1a   :  { %p122_p7 = pnand %p121_p6, %p115_p3 }
  0x1b   :  { %v32_v26 = vmul.f32 %v31_v19, %v29_v21  ;;  %v44_v27 = vmax.f32 %v43_v22, 0.0  ;;  %v58_v28 = vadd.f32 %v57_v20, %v55_v23 }
  0x1d   :  { %v33_v30 = vadd.f32 %v32_v26, %v17_v24  ;;  %v47_v31 = vmul.f32 %v46_v25, %v44_v27  ;;  %v59_v32 = vmax.f32 %v58_v28, 0.0 }
  0x1f   :  { %v48_v33 = vadd.f32 %v47_v31, %v33_v30  ;;  %v62_v34 = vmul.f32 %v61_v29, %v59_v32 }
  0x21   :  { %v63_v35 = vadd.f32 %v62_v34, %v48_v33 }
  0x23   :  { %v97_v36 = vmul.f32 -1.442695, %v63_v35 }
  0x25   :  { %100 = vpow2.f32 %v97_v36 }
  0x2f   :  { %v101_v37 = vpop.eup %100 }
  0x30   :  { %v67_v38 = vadd.f32 1.0, %v101_v37 }
  0x32   :  { %102 = vrcp.f32 %v67_v38 }
  0x3c   :  { %v103_v39 = vpop.eup %102 }
  0x3d   :  { %70 = vst [vmem:[#allocation4] sm:$0x1] %v103_v39 }
  0x3e   :  { %125 = shalt.err (!%p122_p7)
}
  0x3f   :  { %s126_s12 = scalar_lea.hbm %s195_s2, 16 }
  0x40   :  { %p127_p8 = scmp.ne.s32.totalorder %s195_s2, %s126_s12  ;;  %p130_p9 = scmp.lt.u32.totalorder %s126_s12, %s195_s2 }
  0x42   :  { %p132_p10 = pnand %p130_p9, %p127_p8 }
  0x44   :  { %135 = shalt.err (!%p132_p10)
}
  0x45   :  { %80 = dma.vmem_to_hbm [thread:$0]  %s78_s7, 16, %s195_s2, [#allocation5]  }
  0x46   :  { %138 = dma.done.wait [#allocation5], 16  }
  0x47   :  { %139 = vsyncadd [#allocation5], 4294967280 }
  0x48   :  { %84 = vsyncpa [#allocation5], 1 }

</bundles_post_ra>
